<compile_context>
chip_gen: v7x
topology: tpu7x:2x2x1
jax: 0.10.0
libtpu: 0.0.40
codegen_flags: <defaults>
</compile_context>

<pallas_src>
import math

import jax
import jax.numpy as jnp
from jax import lax
from jax.experimental import pallas as pl
from jax.experimental.pallas import tpu as pltpu


def _make_kernel(seq_len, seq_tile, d_model):
    scale = float(math.sqrt(d_model))   # Python scalar -> jaxpr literal, not a captured const

    def kernel(ids_ref, tok_hbm_ref, pos_ref, gamma_ref, beta_ref,
               out_ref, tok_buf, sem):
        b = pl.program_id(0)
        s = pl.program_id(1)
        base = b * seq_len + s * seq_tile

        # --- data-dependent row gather: DMA only the indexed embedding rows HBM -> VMEM ---
        copies = []
        for i in range(seq_tile):                      # issue all row DMAs first ...
            row = ids_ref[base + i]                    # scalar read from SMEM
            cp = pltpu.make_async_copy(tok_hbm_ref.at[row], tok_buf.at[i], sem.at[i])
            cp.start()
            copies.append(cp)
        for cp in copies:                              # ... then wait on all of them
            cp.wait()

        emb = tok_buf[...] * scale + pos_ref[...]      # (TS, D)

        # TODO(synk): dropout is identity (eval mode); train-mode random mask omitted.

        # --- LayerNorm over d_model (biased variance, eps=1e-5, PyTorch default) ---
        mean = jnp.mean(emb, axis=-1, keepdims=True)
        ctr = emb - mean
        var = jnp.mean(ctr * ctr, axis=-1, keepdims=True)
        normed = ctr * lax.rsqrt(var + 1e-5)           # rsqrt -> EUP slot
        out_ref[0] = (normed * gamma_ref[...] + beta_ref[...]).astype(out_ref.dtype)

    return kernel


def simple_text_embedding(ids, token_table, pos_table, gamma, beta):
    """ids: (B, S) int; token_table: (V, D); pos_table: (max_len, D). Returns (B, S, D) f32."""
    B, S = ids.shape
    V, D = token_table.shape

    # Sequence tile: largest of these that divides S (all multiples of 8 -> legal blocks);
    # otherwise fall back to the full sequence (block == full dim is always legal).
    TS, n_s = S, 1
    for cand in (128, 64, 32, 16, 8):
        if S % cand == 0:
            TS, n_s = cand, S // cand
            break

    kernel = _make_kernel(S, TS, D)

    grid_spec = pltpu.PrefetchScalarGridSpec(
        num_scalar_prefetch=1,                                    # ids -> SMEM
        grid=(B, n_s),
        in_specs=[
            pl.BlockSpec(memory_space=pl.ANY),                    # token_table stays in HBM
            pl.BlockSpec((TS, D), lambda b, s, ids: (s, 0)),      # pos rows for this seq tile
            pl.BlockSpec((1, D), lambda b, s, ids: (0, 0)),       # gamma
            pl.BlockSpec((1, D), lambda b, s, ids: (0, 0)),       # beta
        ],
        out_specs=pl.BlockSpec((1, TS, D), lambda b, s, ids: (b, s, 0)),
        scratch_shapes=[
            pltpu.VMEM((TS, D), jnp.float32),                     # gathered token rows
            pltpu.SemaphoreType.DMA((TS,)),                       # one sem per in-flight row
        ],
    )

    return pl.pallas_call(
        kernel,
        out_shape=jax.ShapeDtypeStruct((B, S, D), jnp.float32),
        grid_spec=grid_spec,
        compiler_params=pltpu.CompilerParams(
            dimension_semantics=("parallel", "parallel")),        # 2 TCs on v7x
    )(ids.reshape(B * S).astype(jnp.int32),
      token_table.astype(jnp.float32),
      pos_table[:S].astype(jnp.float32),                          # only first S rows needed
      gamma.reshape(1, D).astype(jnp.float32),
      beta.reshape(1, D).astype(jnp.float32))


def _reference(ids, token_table, pos_table, gamma, beta):
    S = ids.shape[1]
    D = token_table.shape[1]
    tok = token_table[ids] * math.sqrt(D)
    emb = tok + pos_table[jnp.arange(S)][None, :, :]
    mean = jnp.mean(emb, axis=-1, keepdims=True)
    var = jnp.mean((emb - mean) ** 2, axis=-1, keepdims=True)
    return (emb - mean) / jnp.sqrt(var + 1e-5) * gamma + beta


if __name__ == "__main__":
    # small shapes consistent with the module
    vocab_size, d_model, max_len = 64, 32, 16
    batch, seq = 2, 8

    key = jax.random.PRNGKey(0)
    k_ids, k_tok, k_pos = jax.random.split(key, 3)

    ids = jax.random.randint(k_ids, (batch, seq), 0, vocab_size, dtype=jnp.int32)
    token_table = jax.random.normal(k_tok, (vocab_size, d_model), dtype=jnp.float32)
    pos_table = jax.random.normal(k_pos, (max_len, d_model), dtype=jnp.float32)
    gamma = jnp.ones((d_model,), dtype=jnp.float32)   # nn.LayerNorm default init
    beta = jnp.zeros((d_model,), dtype=jnp.float32)

    out = simple_text_embedding(ids, token_table, pos_table, gamma, beta)
    out = jax.block_until_ready(out)

    ref = _reference(ids, token_table, pos_table, gamma, beta)
    assert out.shape == (batch, seq, d_model)
    assert jnp.allclose(out, ref, atol=1e-4, rtol=1e-4), "mismatch vs pure-JAX reference"

    print("KERNEL_OK")
</pallas_src>

<mosaic_0001>
module attributes {stable_mosaic.version = 11 : i64} {
  func.func @kernel(%arg0: i32, %arg1: i32, %arg2: memref<16xi32, #tpu.memory_space<smem>>, %arg3: memref<64x32xf32, #tpu.memory_space<any>>, %arg4: memref<8x32xf32, #tpu.memory_space<vmem>>, %arg5: memref<1x32xf32, #tpu.memory_space<vmem>>, %arg6: memref<1x32xf32, #tpu.memory_space<vmem>>, %arg7: memref<1x8x32xf32, #tpu.memory_space<vmem>>, %arg8: memref<8x32xf32, #tpu.memory_space<vmem>>, %arg9: memref<8x!tpu.dma_semaphore, #tpu.memory_space<semaphore_mem>>) attributes {dimension_semantics = [#tpu.dimension_semantics<parallel>, #tpu.dimension_semantics<parallel>], iteration_bounds = array<i64: 2, 1>, scalar_prefetch = 1 : i64, scratch_operands = 2 : i64, tpu.core_type = #tpu.core_type<tc>, window_params = [{}, {transform_indices = @transform_1, window_bounds = array<i64: 8, 32>}, {pipeline_mode = #tpu.pipeline_mode<synchronous>, transform_indices = @transform_2, window_bounds = array<i64: 1, 32>}, {pipeline_mode = #tpu.pipeline_mode<synchronous>, transform_indices = @transform_3, window_bounds = array<i64: 1, 32>}, {transform_indices = @transform_4, window_bounds = array<i64: 1, 8, 32>}]} {
    %c8_i32 = arith.constant 8 : i32
    %0 = arith.muli %arg0, %c8_i32 : i32
    %c8_i32_0 = arith.constant 8 : i32
    %1 = arith.muli %arg1, %c8_i32_0 : i32
    %2 = arith.addi %0, %1 : i32
    %c0_i32 = arith.constant 0 : i32
    %3 = arith.addi %2, %c0_i32 : i32
    %4 = arith.index_cast %3 : i32 to index
    %5 = memref.load %arg2[%4] : memref<16xi32, #tpu.memory_space<smem>>
    %c0_i32_1 = arith.constant 0 : i32
    %c0_i32_2 = arith.constant 0 : i32
    %c0_i32_3 = arith.constant 0 : i32
    %6 = tpu.memref_slice %arg3[%5, %c0_i32_3] : memref<64x32xf32, #tpu.memory_space<any>> -> memref<1x32xf32, #tpu.memory_space<any>>
    %7 = tpu.memref_squeeze %6 : memref<1x32xf32, #tpu.memory_space<any>> -> memref<32xf32, #tpu.memory_space<any>>
    %c0_i32_4 = arith.constant 0 : i32
    %8 = tpu.memref_slice %arg8[%c0_i32_1, %c0_i32_4] : memref<8x32xf32, #tpu.memory_space<vmem>> -> memref<1x32xf32, #tpu.memory_space<vmem>>
    %9 = tpu.memref_squeeze %8 : memref<1x32xf32, #tpu.memory_space<vmem>> -> memref<32xf32, #tpu.memory_space<vmem>>
    %10 = tpu.memref_slice %arg9[%c0_i32_2] : memref<8x!tpu.dma_semaphore, #tpu.memory_space<semaphore_mem>> -> memref<1x!tpu.dma_semaphore, #tpu.memory_space<semaphore_mem>>
    %11 = tpu.memref_squeeze %10 : memref<1x!tpu.dma_semaphore, #tpu.memory_space<semaphore_mem>> -> memref<!tpu.dma_semaphore, #tpu.memory_space<semaphore_mem>>
    tpu.enqueue_dma source(%7 : memref<32xf32, #tpu.memory_space<any>>) target(%9 : memref<32xf32, #tpu.memory_space<vmem>>) target_semaphore(%11 : memref<!tpu.dma_semaphore, #tpu.memory_space<semaphore_mem>>)
    %c1_i32 = arith.constant 1 : i32
    %12 = arith.addi %2, %c1_i32 : i32
    %13 = arith.index_cast %12 : i32 to index
    %14 = memref.load %arg2[%13] : memref<16xi32, #tpu.memory_space<smem>>
    %c1_i32_5 = arith.constant 1 : i32
    %c1_i32_6 = arith.constant 1 : i32
    %c0_i32_7 = arith.constant 0 : i32
    %15 = tpu.memref_slice %arg3[%14, %c0_i32_7] : memref<64x32xf32, #tpu.memory_space<any>> -> memref<1x32xf32, #tpu.memory_space<any>>
    %16 = tpu.memref_squeeze %15 : memref<1x32xf32, #tpu.memory_space<any>> -> memref<32xf32, #tpu.memory_space<any>>
    %c0_i32_8 = arith.constant 0 : i32
    %17 = tpu.memref_slice %arg8[%c1_i32_5, %c0_i32_8] : memref<8x32xf32, #tpu.memory_space<vmem>> -> memref<1x32xf32, #tpu.memory_space<vmem>>
    %18 = tpu.memref_squeeze %17 : memref<1x32xf32, #tpu.memory_space<vmem>> -> memref<32xf32, #tpu.memory_space<vmem>>
    %19 = tpu.memref_slice %arg9[%c1_i32_6] : memref<8x!tpu.dma_semaphore, #tpu.memory_space<semaphore_mem>> -> memref<1x!tpu.dma_semaphore, #tpu.memory_space<semaphore_mem>>
    %20 = tpu.memref_squeeze %19 : memref<1x!tpu.dma_semaphore, #tpu.memory_space<semaphore_mem>> -> memref<!tpu.dma_semaphore, #tpu.memory_space<semaphore_mem>>
    tpu.enqueue_dma source(%16 : memref<32xf32, #tpu.memory_space<any>>) target(%18 : memref<32xf32, #tpu.memory_space<vmem>>) target_semaphore(%20 : memref<!tpu.dma_semaphore, #tpu.memory_space<semaphore_mem>>)
    %c2_i32 = arith.constant 2 : i32
    %21 = arith.addi %2, %c2_i32 : i32
    %22 = arith.index_cast %21 : i32 to index
    %23 = memref.load %arg2[%22] : memref<16xi32, #tpu.memory_space<smem>>
    %c2_i32_9 = arith.constant 2 : i32
    %c2_i32_10 = arith.constant 2 : i32
    %c0_i32_11 = arith.constant 0 : i32
    %24 = tpu.memref_slice %arg3[%23, %c0_i32_11] : memref<64x32xf32, #tpu.memory_space<any>> -> memref<1x32xf32, #tpu.memory_space<any>>
    %25 = tpu.memref_squeeze %24 : memref<1x32xf32, #tpu.memory_space<any>> -> memref<32xf32, #tpu.memory_space<any>>
    %c0_i32_12 = arith.constant 0 : i32
    %26 = tpu.memref_slice %arg8[%c2_i32_9, %c0_i32_12] : memref<8x32xf32, #tpu.memory_space<vmem>> -> memref<1x32xf32, #tpu.memory_space<vmem>>
    %27 = tpu.memref_squeeze %26 : memref<1x32xf32, #tpu.memory_space<vmem>> -> memref<32xf32, #tpu.memory_space<vmem>>
    %28 = tpu.memref_slice %arg9[%c2_i32_10] : memref<8x!tpu.dma_semaphore, #tpu.memory_space<semaphore_mem>> -> memref<1x!tpu.dma_semaphore, #tpu.memory_space<semaphore_mem>>
    %29 = tpu.memref_squeeze %28 : memref<1x!tpu.dma_semaphore, #tpu.memory_space<semaphore_mem>> -> memref<!tpu.dma_semaphore, #tpu.memory_space<semaphore_mem>>
    tpu.enqueue_dma source(%25 : memref<32xf32, #tpu.memory_space<any>>) target(%27 : memref<32xf32, #tpu.memory_space<vmem>>) target_semaphore(%29 : memref<!tpu.dma_semaphore, #tpu.memory_space<semaphore_mem>>)
    %c3_i32 = arith.constant 3 : i32
    %30 = arith.addi %2, %c3_i32 : i32
    %31 = arith.index_cast %30 : i32 to index
    %32 = memref.load %arg2[%31] : memref<16xi32, #tpu.memory_space<smem>>
    %c3_i32_13 = arith.constant 3 : i32
    %c3_i32_14 = arith.constant 3 : i32
    %c0_i32_15 = arith.constant 0 : i32
    %33 = tpu.memref_slice %arg3[%32, %c0_i32_15] : memref<64x32xf32, #tpu.memory_space<any>> -> memref<1x32xf32, #tpu.memory_space<any>>
    %34 = tpu.memref_squeeze %33 : memref<1x32xf32, #tpu.memory_space<any>> -> memref<32xf32, #tpu.memory_space<any>>
    %c0_i32_16 = arith.constant 0 : i32
    %35 = tpu.memref_slice %arg8[%c3_i32_13, %c0_i32_16] : memref<8x32xf32, #tpu.memory_space<vmem>> -> memref<1x32xf32, #tpu.memory_space<vmem>>
    %36 = tpu.memref_squeeze %35 : memref<1x32xf32, #tpu.memory_space<vmem>> -> memref<32xf32, #tpu.memory_space<vmem>>
    %37 = tpu.memref_slice %arg9[%c3_i32_14] : memref<8x!tpu.dma_semaphore, #tpu.memory_space<semaphore_mem>> -> memref<1x!tpu.dma_semaphore, #tpu.memory_space<semaphore_mem>>
    %38 = tpu.memref_squeeze %37 : memref<1x!tpu.dma_semaphore, #tpu.memory_space<semaphore_mem>> -> memref<!tpu.dma_semaphore, #tpu.memory_space<semaphore_mem>>
    tpu.enqueue_dma source(%34 : memref<32xf32, #tpu.memory_space<any>>) target(%36 : memref<32xf32, #tpu.memory_space<vmem>>) target_semaphore(%38 : memref<!tpu.dma_semaphore, #tpu.memory_space<semaphore_mem>>)
    %c4_i32 = arith.constant 4 : i32
    %39 = arith.addi %2, %c4_i32 : i32
    %40 = arith.index_cast %39 : i32 to index
    %41 = memref.load %arg2[%40] : memref<16xi32, #tpu.memory_space<smem>>
    %c4_i32_17 = arith.constant 4 : i32
    %c4_i32_18 = arith.constant 4 : i32
    %c0_i32_19 = arith.constant 0 : i32
    %42 = tpu.memref_slice %arg3[%41, %c0_i32_19] : memref<64x32xf32, #tpu.memory_space<any>> -> memref<1x32xf32, #tpu.memory_space<any>>
    %43 = tpu.memref_squeeze %42 : memref<1x32xf32, #tpu.memory_space<any>> -> memref<32xf32, #tpu.memory_space<any>>
    %c0_i32_20 = arith.constant 0 : i32
    %44 = tpu.memref_slice %arg8[%c4_i32_17, %c0_i32_20] : memref<8x32xf32, #tpu.memory_space<vmem>> -> memref<1x32xf32, #tpu.memory_space<vmem>>
    %45 = tpu.memref_squeeze %44 : memref<1x32xf32, #tpu.memory_space<vmem>> -> memref<32xf32, #tpu.memory_space<vmem>>
    %46 = tpu.memref_slice %arg9[%c4_i32_18] : memref<8x!tpu.dma_semaphore, #tpu.memory_space<semaphore_mem>> -> memref<1x!tpu.dma_semaphore, #tpu.memory_space<semaphore_mem>>
    %47 = tpu.memref_squeeze %46 : memref<1x!tpu.dma_semaphore, #tpu.memory_space<semaphore_mem>> -> memref<!tpu.dma_semaphore, #tpu.memory_space<semaphore_mem>>
    tpu.enqueue_dma source(%43 : memref<32xf32, #tpu.memory_space<any>>) target(%45 : memref<32xf32, #tpu.memory_space<vmem>>) target_semaphore(%47 : memref<!tpu.dma_semaphore, #tpu.memory_space<semaphore_mem>>)
    %c5_i32 = arith.constant 5 : i32
    %48 = arith.addi %2, %c5_i32 : i32
    %49 = arith.index_cast %48 : i32 to index
    %50 = memref.load %arg2[%49] : memref<16xi32, #tpu.memory_space<smem>>
    %c5_i32_21 = arith.constant 5 : i32
    %c5_i32_22 = arith.constant 5 : i32
    %c0_i32_23 = arith.constant 0 : i32
    %51 = tpu.memref_slice %arg3[%50, %c0_i32_23] : memref<64x32xf32, #tpu.memory_space<any>> -> memref<1x32xf32, #tpu.memory_space<any>>
    %52 = tpu.memref_squeeze %51 : memref<1x32xf32, #tpu.memory_space<any>> -> memref<32xf32, #tpu.memory_space<any>>
    %c0_i32_24 = arith.constant 0 : i32
    %53 = tpu.memref_slice %arg8[%c5_i32_21, %c0_i32_24] : memref<8x32xf32, #tpu.memory_space<vmem>> -> memref<1x32xf32, #tpu.memory_space<vmem>>
    %54 = tpu.memref_squeeze %53 : memref<1x32xf32, #tpu.memory_space<vmem>> -> memref<32xf32, #tpu.memory_space<vmem>>
    %55 = tpu.memref_slice %arg9[%c5_i32_22] : memref<8x!tpu.dma_semaphore, #tpu.memory_space<semaphore_mem>> -> memref<1x!tpu.dma_semaphore, #tpu.memory_space<semaphore_mem>>
    %56 = tpu.memref_squeeze %55 : memref<1x!tpu.dma_semaphore, #tpu.memory_space<semaphore_mem>> -> memref<!tpu.dma_semaphore, #tpu.memory_space<semaphore_mem>>
    tpu.enqueue_dma source(%52 : memref<32xf32, #tpu.memory_space<any>>) target(%54 : memref<32xf32, #tpu.memory_space<vmem>>) target_semaphore(%56 : memref<!tpu.dma_semaphore, #tpu.memory_space<semaphore_mem>>)
    %c6_i32 = arith.constant 6 : i32
    %57 = arith.addi %2, %c6_i32 : i32
    %58 = arith.index_cast %57 : i32 to index
    %59 = memref.load %arg2[%58] : memref<16xi32, #tpu.memory_space<smem>>
    %c6_i32_25 = arith.constant 6 : i32
    %c6_i32_26 = arith.constant 6 : i32
    %c0_i32_27 = arith.constant 0 : i32
    %60 = tpu.memref_slice %arg3[%59, %c0_i32_27] : memref<64x32xf32, #tpu.memory_space<any>> -> memref<1x32xf32, #tpu.memory_space<any>>
    %61 = tpu.memref_squeeze %60 : memref<1x32xf32, #tpu.memory_space<any>> -> memref<32xf32, #tpu.memory_space<any>>
    %c0_i32_28 = arith.constant 0 : i32
    %62 = tpu.memref_slice %arg8[%c6_i32_25, %c0_i32_28] : memref<8x32xf32, #tpu.memory_space<vmem>> -> memref<1x32xf32, #tpu.memory_space<vmem>>
    %63 = tpu.memref_squeeze %62 : memref<1x32xf32, #tpu.memory_space<vmem>> -> memref<32xf32, #tpu.memory_space<vmem>>
    %64 = tpu.memref_slice %arg9[%c6_i32_26] : memref<8x!tpu.dma_semaphore, #tpu.memory_space<semaphore_mem>> -> memref<1x!tpu.dma_semaphore, #tpu.memory_space<semaphore_mem>>
    %65 = tpu.memref_squeeze %64 : memref<1x!tpu.dma_semaphore, #tpu.memory_space<semaphore_mem>> -> memref<!tpu.dma_semaphore, #tpu.memory_space<semaphore_mem>>
    tpu.enqueue_dma source(%61 : memref<32xf32, #tpu.memory_space<any>>) target(%63 : memref<32xf32, #tpu.memory_space<vmem>>) target_semaphore(%65 : memref<!tpu.dma_semaphore, #tpu.memory_space<semaphore_mem>>)
    %c7_i32 = arith.constant 7 : i32
    %66 = arith.addi %2, %c7_i32 : i32
    %67 = arith.index_cast %66 : i32 to index
    %68 = memref.load %arg2[%67] : memref<16xi32, #tpu.memory_space<smem>>
    %c7_i32_29 = arith.constant 7 : i32
    %c7_i32_30 = arith.constant 7 : i32
    %c0_i32_31 = arith.constant 0 : i32
    %69 = tpu.memref_slice %arg3[%68, %c0_i32_31] : memref<64x32xf32, #tpu.memory_space<any>> -> memref<1x32xf32, #tpu.memory_space<any>>
    %70 = tpu.memref_squeeze %69 : memref<1x32xf32, #tpu.memory_space<any>> -> memref<32xf32, #tpu.memory_space<any>>
    %c0_i32_32 = arith.constant 0 : i32
    %71 = tpu.memref_slice %arg8[%c7_i32_29, %c0_i32_32] : memref<8x32xf32, #tpu.memory_space<vmem>> -> memref<1x32xf32, #tpu.memory_space<vmem>>
    %72 = tpu.memref_squeeze %71 : memref<1x32xf32, #tpu.memory_space<vmem>> -> memref<32xf32, #tpu.memory_space<vmem>>
    %73 = tpu.memref_slice %arg9[%c7_i32_30] : memref<8x!tpu.dma_semaphore, #tpu.memory_space<semaphore_mem>> -> memref<1x!tpu.dma_semaphore, #tpu.memory_space<semaphore_mem>>
    %74 = tpu.memref_squeeze %73 : memref<1x!tpu.dma_semaphore, #tpu.memory_space<semaphore_mem>> -> memref<!tpu.dma_semaphore, #tpu.memory_space<semaphore_mem>>
    tpu.enqueue_dma source(%70 : memref<32xf32, #tpu.memory_space<any>>) target(%72 : memref<32xf32, #tpu.memory_space<vmem>>) target_semaphore(%74 : memref<!tpu.dma_semaphore, #tpu.memory_space<semaphore_mem>>)
    %c0_i32_33 = arith.constant 0 : i32
    %c0_i32_34 = arith.constant 0 : i32
    %c0_i32_35 = arith.constant 0 : i32
    %75 = tpu.memref_slice %arg3[%5, %c0_i32_35] : memref<64x32xf32, #tpu.memory_space<any>> -> memref<1x32xf32, #tpu.memory_space<any>>
    %76 = tpu.memref_squeeze %75 : memref<1x32xf32, #tpu.memory_space<any>> -> memref<32xf32, #tpu.memory_space<any>>
    %c0_i32_36 = arith.constant 0 : i32
    %77 = tpu.memref_slice %arg8[%c0_i32_33, %c0_i32_36] : memref<8x32xf32, #tpu.memory_space<vmem>> -> memref<1x32xf32, #tpu.memory_space<vmem>>
    %78 = tpu.memref_squeeze %77 : memref<1x32xf32, #tpu.memory_space<vmem>> -> memref<32xf32, #tpu.memory_space<vmem>>
    %79 = tpu.memref_slice %arg9[%c0_i32_34] : memref<8x!tpu.dma_semaphore, #tpu.memory_space<semaphore_mem>> -> memref<1x!tpu.dma_semaphore, #tpu.memory_space<semaphore_mem>>
    %80 = tpu.memref_squeeze %79 : memref<1x!tpu.dma_semaphore, #tpu.memory_space<semaphore_mem>> -> memref<!tpu.dma_semaphore, #tpu.memory_space<semaphore_mem>>
    tpu.wait_dma2 semaphore(%80 : memref<!tpu.dma_semaphore, #tpu.memory_space<semaphore_mem>>) src(%76 : memref<32xf32, #tpu.memory_space<any>>) dst(%78 : memref<32xf32, #tpu.memory_space<vmem>>)
    %c1_i32_37 = arith.constant 1 : i32
    %c1_i32_38 = arith.constant 1 : i32
    %c0_i32_39 = arith.constant 0 : i32
    %81 = tpu.memref_slice %arg3[%14, %c0_i32_39] : memref<64x32xf32, #tpu.memory_space<any>> -> memref<1x32xf32, #tpu.memory_space<any>>
    %82 = tpu.memref_squeeze %81 : memref<1x32xf32, #tpu.memory_space<any>> -> memref<32xf32, #tpu.memory_space<any>>
    %c0_i32_40 = arith.constant 0 : i32
    %83 = tpu.memref_slice %arg8[%c1_i32_37, %c0_i32_40] : memref<8x32xf32, #tpu.memory_space<vmem>> -> memref<1x32xf32, #tpu.memory_space<vmem>>
    %84 = tpu.memref_squeeze %83 : memref<1x32xf32, #tpu.memory_space<vmem>> -> memref<32xf32, #tpu.memory_space<vmem>>
    %85 = tpu.memref_slice %arg9[%c1_i32_38] : memref<8x!tpu.dma_semaphore, #tpu.memory_space<semaphore_mem>> -> memref<1x!tpu.dma_semaphore, #tpu.memory_space<semaphore_mem>>
    %86 = tpu.memref_squeeze %85 : memref<1x!tpu.dma_semaphore, #tpu.memory_space<semaphore_mem>> -> memref<!tpu.dma_semaphore, #tpu.memory_space<semaphore_mem>>
    tpu.wait_dma2 semaphore(%86 : memref<!tpu.dma_semaphore, #tpu.memory_space<semaphore_mem>>) src(%82 : memref<32xf32, #tpu.memory_space<any>>) dst(%84 : memref<32xf32, #tpu.memory_space<vmem>>)
    %c2_i32_41 = arith.constant 2 : i32
    %c2_i32_42 = arith.constant 2 : i32
    %c0_i32_43 = arith.constant 0 : i32
    %87 = tpu.memref_slice %arg3[%23, %c0_i32_43] : memref<64x32xf32, #tpu.memory_space<any>> -> memref<1x32xf32, #tpu.memory_space<any>>
    %88 = tpu.memref_squeeze %87 : memref<1x32xf32, #tpu.memory_space<any>> -> memref<32xf32, #tpu.memory_space<any>>
    %c0_i32_44 = arith.constant 0 : i32
    %89 = tpu.memref_slice %arg8[%c2_i32_41, %c0_i32_44] : memref<8x32xf32, #tpu.memory_space<vmem>> -> memref<1x32xf32, #tpu.memory_space<vmem>>
    %90 = tpu.memref_squeeze %89 : memref<1x32xf32, #tpu.memory_space<vmem>> -> memref<32xf32, #tpu.memory_space<vmem>>
    %91 = tpu.memref_slice %arg9[%c2_i32_42] : memref<8x!tpu.dma_semaphore, #tpu.memory_space<semaphore_mem>> -> memref<1x!tpu.dma_semaphore, #tpu.memory_space<semaphore_mem>>
    %92 = tpu.memref_squeeze %91 : memref<1x!tpu.dma_semaphore, #tpu.memory_space<semaphore_mem>> -> memref<!tpu.dma_semaphore, #tpu.memory_space<semaphore_mem>>
    tpu.wait_dma2 semaphore(%92 : memref<!tpu.dma_semaphore, #tpu.memory_space<semaphore_mem>>) src(%88 : memref<32xf32, #tpu.memory_space<any>>) dst(%90 : memref<32xf32, #tpu.memory_space<vmem>>)
    %c3_i32_45 = arith.constant 3 : i32
    %c3_i32_46 = arith.constant 3 : i32
    %c0_i32_47 = arith.constant 0 : i32
    %93 = tpu.memref_slice %arg3[%32, %c0_i32_47] : memref<64x32xf32, #tpu.memory_space<any>> -> memref<1x32xf32, #tpu.memory_space<any>>
    %94 = tpu.memref_squeeze %93 : memref<1x32xf32, #tpu.memory_space<any>> -> memref<32xf32, #tpu.memory_space<any>>
    %c0_i32_48 = arith.constant 0 : i32
    %95 = tpu.memref_slice %arg8[%c3_i32_45, %c0_i32_48] : memref<8x32xf32, #tpu.memory_space<vmem>> -> memref<1x32xf32, #tpu.memory_space<vmem>>
    %96 = tpu.memref_squeeze %95 : memref<1x32xf32, #tpu.memory_space<vmem>> -> memref<32xf32, #tpu.memory_space<vmem>>
    %97 = tpu.memref_slice %arg9[%c3_i32_46] : memref<8x!tpu.dma_semaphore, #tpu.memory_space<semaphore_mem>> -> memref<1x!tpu.dma_semaphore, #tpu.memory_space<semaphore_mem>>
    %98 = tpu.memref_squeeze %97 : memref<1x!tpu.dma_semaphore, #tpu.memory_space<semaphore_mem>> -> memref<!tpu.dma_semaphore, #tpu.memory_space<semaphore_mem>>
    tpu.wait_dma2 semaphore(%98 : memref<!tpu.dma_semaphore, #tpu.memory_space<semaphore_mem>>) src(%94 : memref<32xf32, #tpu.memory_space<any>>) dst(%96 : memref<32xf32, #tpu.memory_space<vmem>>)
    %c4_i32_49 = arith.constant 4 : i32
    %c4_i32_50 = arith.constant 4 : i32
    %c0_i32_51 = arith.constant 0 : i32
    %99 = tpu.memref_slice %arg3[%41, %c0_i32_51] : memref<64x32xf32, #tpu.memory_space<any>> -> memref<1x32xf32, #tpu.memory_space<any>>
    %100 = tpu.memref_squeeze %99 : memref<1x32xf32, #tpu.memory_space<any>> -> memref<32xf32, #tpu.memory_space<any>>
    %c0_i32_52 = arith.constant 0 : i32
    %101 = tpu.memref_slice %arg8[%c4_i32_49, %c0_i32_52] : memref<8x32xf32, #tpu.memory_space<vmem>> -> memref<1x32xf32, #tpu.memory_space<vmem>>
    %102 = tpu.memref_squeeze %101 : memref<1x32xf32, #tpu.memory_space<vmem>> -> memref<32xf32, #tpu.memory_space<vmem>>
    %103 = tpu.memref_slice %arg9[%c4_i32_50] : memref<8x!tpu.dma_semaphore, #tpu.memory_space<semaphore_mem>> -> memref<1x!tpu.dma_semaphore, #tpu.memory_space<semaphore_mem>>
    %104 = tpu.memref_squeeze %103 : memref<1x!tpu.dma_semaphore, #tpu.memory_space<semaphore_mem>> -> memref<!tpu.dma_semaphore, #tpu.memory_space<semaphore_mem>>
    tpu.wait_dma2 semaphore(%104 : memref<!tpu.dma_semaphore, #tpu.memory_space<semaphore_mem>>) src(%100 : memref<32xf32, #tpu.memory_space<any>>) dst(%102 : memref<32xf32, #tpu.memory_space<vmem>>)
    %c5_i32_53 = arith.constant 5 : i32
    %c5_i32_54 = arith.constant 5 : i32
    %c0_i32_55 = arith.constant 0 : i32
    %105 = tpu.memref_slice %arg3[%50, %c0_i32_55] : memref<64x32xf32, #tpu.memory_space<any>> -> memref<1x32xf32, #tpu.memory_space<any>>
    %106 = tpu.memref_squeeze %105 : memref<1x32xf32, #tpu.memory_space<any>> -> memref<32xf32, #tpu.memory_space<any>>
    %c0_i32_56 = arith.constant 0 : i32
    %107 = tpu.memref_slice %arg8[%c5_i32_53, %c0_i32_56] : memref<8x32xf32, #tpu.memory_space<vmem>> -> memref<1x32xf32, #tpu.memory_space<vmem>>
    %108 = tpu.memref_squeeze %107 : memref<1x32xf32, #tpu.memory_space<vmem>> -> memref<32xf32, #tpu.memory_space<vmem>>
    %109 = tpu.memref_slice %arg9[%c5_i32_54] : memref<8x!tpu.dma_semaphore, #tpu.memory_space<semaphore_mem>> -> memref<1x!tpu.dma_semaphore, #tpu.memory_space<semaphore_mem>>
    %110 = tpu.memref_squeeze %109 : memref<1x!tpu.dma_semaphore, #tpu.memory_space<semaphore_mem>> -> memref<!tpu.dma_semaphore, #tpu.memory_space<semaphore_mem>>
    tpu.wait_dma2 semaphore(%110 : memref<!tpu.dma_semaphore, #tpu.memory_space<semaphore_mem>>) src(%106 : memref<32xf32, #tpu.memory_space<any>>) dst(%108 : memref<32xf32, #tpu.memory_space<vmem>>)
    %c6_i32_57 = arith.constant 6 : i32
    %c6_i32_58 = arith.constant 6 : i32
    %c0_i32_59 = arith.constant 0 : i32
    %111 = tpu.memref_slice %arg3[%59, %c0_i32_59] : memref<64x32xf32, #tpu.memory_space<any>> -> memref<1x32xf32, #tpu.memory_space<any>>
    %112 = tpu.memref_squeeze %111 : memref<1x32xf32, #tpu.memory_space<any>> -> memref<32xf32, #tpu.memory_space<any>>
    %c0_i32_60 = arith.constant 0 : i32
    %113 = tpu.memref_slice %arg8[%c6_i32_57, %c0_i32_60] : memref<8x32xf32, #tpu.memory_space<vmem>> -> memref<1x32xf32, #tpu.memory_space<vmem>>
    %114 = tpu.memref_squeeze %113 : memref<1x32xf32, #tpu.memory_space<vmem>> -> memref<32xf32, #tpu.memory_space<vmem>>
    %115 = tpu.memref_slice %arg9[%c6_i32_58] : memref<8x!tpu.dma_semaphore, #tpu.memory_space<semaphore_mem>> -> memref<1x!tpu.dma_semaphore, #tpu.memory_space<semaphore_mem>>
    %116 = tpu.memref_squeeze %115 : memref<1x!tpu.dma_semaphore, #tpu.memory_space<semaphore_mem>> -> memref<!tpu.dma_semaphore, #tpu.memory_space<semaphore_mem>>
    tpu.wait_dma2 semaphore(%116 : memref<!tpu.dma_semaphore, #tpu.memory_space<semaphore_mem>>) src(%112 : memref<32xf32, #tpu.memory_space<any>>) dst(%114 : memref<32xf32, #tpu.memory_space<vmem>>)
    %c7_i32_61 = arith.constant 7 : i32
    %c7_i32_62 = arith.constant 7 : i32
    %c0_i32_63 = arith.constant 0 : i32
    %117 = tpu.memref_slice %arg3[%68, %c0_i32_63] : memref<64x32xf32, #tpu.memory_space<any>> -> memref<1x32xf32, #tpu.memory_space<any>>
    %118 = tpu.memref_squeeze %117 : memref<1x32xf32, #tpu.memory_space<any>> -> memref<32xf32, #tpu.memory_space<any>>
    %c0_i32_64 = arith.constant 0 : i32
    %119 = tpu.memref_slice %arg8[%c7_i32_61, %c0_i32_64] : memref<8x32xf32, #tpu.memory_space<vmem>> -> memref<1x32xf32, #tpu.memory_space<vmem>>
    %120 = tpu.memref_squeeze %119 : memref<1x32xf32, #tpu.memory_space<vmem>> -> memref<32xf32, #tpu.memory_space<vmem>>
    %121 = tpu.memref_slice %arg9[%c7_i32_62] : memref<8x!tpu.dma_semaphore, #tpu.memory_space<semaphore_mem>> -> memref<1x!tpu.dma_semaphore, #tpu.memory_space<semaphore_mem>>
    %122 = tpu.memref_squeeze %121 : memref<1x!tpu.dma_semaphore, #tpu.memory_space<semaphore_mem>> -> memref<!tpu.dma_semaphore, #tpu.memory_space<semaphore_mem>>
    tpu.wait_dma2 semaphore(%122 : memref<!tpu.dma_semaphore, #tpu.memory_space<semaphore_mem>>) src(%118 : memref<32xf32, #tpu.memory_space<any>>) dst(%120 : memref<32xf32, #tpu.memory_space<vmem>>)
    %c0 = arith.constant 0 : index
    %c0_65 = arith.constant 0 : index
    %123 = vector.load %arg8[%c0, %c0_65] : memref<8x32xf32, #tpu.memory_space<vmem>>, vector<8x32xf32>
    %cst = arith.constant 5.65685415 : f32
    %124 = vector.broadcast %cst : f32 to vector<8x32xf32>
    %125 = arith.mulf %123, %124 : vector<8x32xf32>
    %c0_66 = arith.constant 0 : index
    %c0_67 = arith.constant 0 : index
    %126 = vector.load %arg4[%c0_66, %c0_67] : memref<8x32xf32, #tpu.memory_space<vmem>>, vector<8x32xf32>
    %127 = arith.addf %125, %126 : vector<8x32xf32>
    %cst_68 = arith.constant dense<0.000000e+00> : vector<8xf32>
    %128 = vector.multi_reduction <add>, %127, %cst_68 [1] : vector<8x32xf32> to vector<8xf32>
    %129 = vector.shape_cast %128 : vector<8xf32> to vector<8x1xf32>
    %cst_69 = arith.constant 3.200000e+01 : f32
    %130 = vector.broadcast %cst_69 : f32 to vector<8x1xf32>
    %131 = arith.divf %129, %130 : vector<8x1xf32>
    %132 = vector.broadcast %131 : vector<8x1xf32> to vector<8x32xf32>
    %133 = arith.subf %127, %132 : vector<8x32xf32>
    %134 = arith.mulf %133, %133 : vector<8x32xf32>
    %cst_70 = arith.constant dense<0.000000e+00> : vector<8xf32>
    %135 = vector.multi_reduction <add>, %134, %cst_70 [1] : vector<8x32xf32> to vector<8xf32>
    %136 = vector.shape_cast %135 : vector<8xf32> to vector<8x1xf32>
    %cst_71 = arith.constant 3.200000e+01 : f32
    %137 = vector.broadcast %cst_71 : f32 to vector<8x1xf32>
    %138 = arith.divf %136, %137 : vector<8x1xf32>
    %cst_72 = arith.constant 9.99999974E-6 : f32
    %139 = vector.broadcast %cst_72 : f32 to vector<8x1xf32>
    %140 = arith.addf %138, %139 : vector<8x1xf32>
    %141 = math.rsqrt %140 : vector<8x1xf32>
    %142 = vector.broadcast %141 : vector<8x1xf32> to vector<8x32xf32>
    %143 = arith.mulf %133, %142 : vector<8x32xf32>
    %c0_73 = arith.constant 0 : index
    %c0_74 = arith.constant 0 : index
    %144 = vector.load %arg5[%c0_73, %c0_74] : memref<1x32xf32, #tpu.memory_space<vmem>>, vector<1x32xf32>
    %145 = vector.broadcast %144 : vector<1x32xf32> to vector<8x32xf32>
    %146 = arith.mulf %143, %145 : vector<8x32xf32>
    %c0_75 = arith.constant 0 : index
    %c0_76 = arith.constant 0 : index
    %147 = vector.load %arg6[%c0_75, %c0_76] : memref<1x32xf32, #tpu.memory_space<vmem>>, vector<1x32xf32>
    %148 = vector.broadcast %147 : vector<1x32xf32> to vector<8x32xf32>
    %149 = arith.addf %146, %148 : vector<8x32xf32>
    %c0_77 = arith.constant 0 : index
    %c0_78 = arith.constant 0 : index
    %c0_79 = arith.constant 0 : index
    %150 = vector.load %arg7[%c0_77, %c0_78, %c0_79] : memref<1x8x32xf32, #tpu.memory_space<vmem>>, vector<1x8x32xf32>
    %151 = vector.shape_cast %150 : vector<1x8x32xf32> to vector<8x32xf32>
    %152 = vector.shape_cast %149 : vector<8x32xf32> to vector<1x8x32xf32>
    tpu.vector_store %arg7[%c0_77, %c0_78, %c0_79], %152 {strides = array<i32>} : memref<1x8x32xf32, #tpu.memory_space<vmem>>, vector<1x8x32xf32>,
    return
  }
  func.func @transform_1(%arg0: i32, %arg1: i32, %arg2: memref<16xi32, #tpu.memory_space<smem>>) -> (i32, i32) {
    %c0_i32 = arith.constant 0 : i32
    %c0_i32_0 = arith.constant 0 : i32
    return %arg1, %c0_i32 : i32, i32
  }
  func.func @transform_2(%arg0: i32, %arg1: i32, %arg2: memref<16xi32, #tpu.memory_space<smem>>) -> (i32, i32) {
    %c0_i32 = arith.constant 0 : i32
    %c0_i32_0 = arith.constant 0 : i32
    %c0_i32_1 = arith.constant 0 : i32
    return %c0_i32, %c0_i32_0 : i32, i32
  }
  func.func @transform_3(%arg0: i32, %arg1: i32, %arg2: memref<16xi32, #tpu.memory_space<smem>>) -> (i32, i32) {
    %c0_i32 = arith.constant 0 : i32
    %c0_i32_0 = arith.constant 0 : i32
    %c0_i32_1 = arith.constant 0 : i32
    return %c0_i32, %c0_i32_0 : i32, i32
  }
  func.func @transform_4(%arg0: i32, %arg1: i32, %arg2: memref<16xi32, #tpu.memory_space<smem>>) -> (i32, i32, i32) {
    %c0_i32 = arith.constant 0 : i32
    %c0_i32_0 = arith.constant 0 : i32
    return %arg0, %arg1, %c0_i32 : i32, i32, i32
  }
}

</mosaic_0001>

<bundles_post_ra>
// kernel: tpu_custom_call.1
= control target key start
LH: loop header
LB: loop body
LE: loop exit
PB: predicated region body
PF: predicated region fallthrough
CT: control target
= control target key end

     0   :  { %s1257_s0 = inlined_call_operand.vmem [shape: s32[16], index: 0, kind: input, shape index: {}]   ;;  %s1258_s1 = inlined_call_operand.vmem [shape: f32[64,32], index: 1, kind: input, shape index: {}]   ;;  %s1259_s2 = inlined_call_operand.vmem [shape: f32[8,32], index: 2, kind: input, shape index: {}]   ;;  %s1260_s3 = inlined_call_operand.vmem [shape: f32[1,32], index: 3, kind: input, shape index: {}]   ;;  %s1261_s4 = inlined_call_operand.vmem [shape: f32[1,32], index: 4, kind: input, shape index: {}]   ;;  %s1262_s5 = inlined_call_operand.hbm [shape: f32[2,8,32], index: 5, kind: output, shape index: {}]  }
   0x1   :  { %s10_s20 = sshll.u32 %s1257_s0, 4  ;;  %s11_s20 = int_to_ptr.vmem [resolvable:$true] %s10_s20 }
   0x2   :  { %s947_s21 = scalar_lea.vmem %s11_s20, 16  ;;  %p952_p1 = scmp.lt.s32.totalorder %s11_s20, %s11_s20 }
   0x3   :  { %p948_p0 = scmp.ne.s32.totalorder %s11_s20, %s947_s21  ;;  %p953_p2 = scmp.lt.s32.totalorder %s947_s21, %s947_s21 }
   0x5   :  { %p954_p3 = por %p953_p2, %p952_p1 }
   0x7   :  { %p955_p4 = pnand %p954_p3, %p948_p0 }
   0x9   :  { %958 = shalt.err (!%p955_p4)  }
   0xa   :  { %s1057_s22 = smov [#allocation5]  }
   0xb   :  { %13 = dma.vmem_to_smem %s11_s20, 16, %s1057_s22, [#allocation4] }
   0xc   :  { %1011 = dma.done.wait [#allocation4], 16 }
   0xd   :  { %1012 = vsyncadd [#allocation4], 4294967280 }
   0xe   :  { %15 = sfence }
   0xf   :  { %16 = vsyncpa [#allocation7], 0 }
  0x10   :  { %18 = vsyncpa [#allocation7 + $0x1], 0  ;;  %s1092_s23 = smov 0   ;;  %s1094_s24 = smov 0  }
  0x11   :  { %s1096_s0 = smov 0   ;;  %s1098_s25 = smov 0  }
  0x12   :  { %s1100_s26 = smov 0   ;;  %s1102_s27 = smov 0  }
  0x13 LB: > { %s868_s28 = sadd.s32 4294967295, %s1055_s27   ;;  %s869_s29 = sadd.s32 4294967294, %s1055_s27   ;;  %s1055_s27 = sphi %s1102_s27, %s24_s27   ;;  %s1051_s26 = sphi %s1100_s26, %s1271_s26   ;;  %s1047_s25 = sphi %s1098_s25, %s1270_s25   ;;  %s1043_s0 = sphi %s1096_s0, %s1269_s0   ;;  %s1039_s24 = sphi %s1094_s24, %s1268_s24   ;;  %s1035_s23 = sphi %s1092_s23, %s1267_s23  }
  0x14   : > { %s36_s30 = sadd.s32 1, %s1051_s26  ;;  %s113_s6 = sadd.s32 1, %s1043_s0 }
  0x15   : > { %p38_p5 = scmp.ge.s32.totalorder %s36_s30, 2  ;;  %p123_p6 = scmp.ne.s32.totalorder %s1043_s0, %s1039_s24 }
  0x16   : > { %p124_p7 = scmp.eq.s32.totalorder %s868_s28, 1  ;;  %p129_p8 = scmp.ne.s32.totalorder %s1039_s24, %s1035_s23 }
  0x17   : > { %s1273_s30 = smov (%p38_p5, %s36_s30), 0  ;;  %p130_p10 = scmp.eq.s32.totalorder %s869_s29, 1 }
  0x18   : > { %p1132_p9 = por %p124_p7, %p123_p6  ;;  %s108_s8 = ssub.s32 %s1051_s26, %s1273_s30 }
  0x19   : > { %p872_p11 = scmp.ge.s32.totalorder %s1055_s27, 1  ;;  %p111_p12 = scmp.eq.s32.totalorder %s108_s8, 0 }
  0x1a   : > { %p1139_p13 = por %p130_p10, %p129_p8  ;;  %p161_p0 = scmp.lt.s32.totalorder %s1055_s27, 3 }
  0x1b   : > { %s1145_s10 = scalar_select %p111_p12, %s1043_s0, %s113_s6  }
  0x1c   : > { %p162_p1 = pnand %p872_p11, %p161_p0 }
  0x1d   : > { %s1263_s11 = sand.u32 (!%p162_p1), 1, %s1039_s24   ;;  %s1149_s12 = sshll.u32 (!%p162_p1), %s1047_s25, 3 }
  0x1e   : > { %165 = sbr.rel (%p162_p1) target bundleno = 458 (0x1ca), region = 32  ;;  %s1153_s13 = sshll.u32 (!%p162_p1), %s1263_s11, 3 }
  0x1f   : > { %s191_s14 = sld [smem:[#allocation5 + %s1149_s12]] (!%p162_p1)  ;;  %s183_s18 = scalar_lea.vmem (!%p162_p1), [#allocation6], %s1153_s13 }
  0x25   : > { %s192_s17 = scalar_lea.vmem %s1258_s1, %s191_s14 }
  0x26   : > { %v210_v0 = vld [vmem:[%s192_s17] sm:$0x1] }
  0x27   : > { %211 = vst [vmem:[#allocation2] sm:$0x1] %v210_v0 }
  0x28   : > { %236 = vsyncadd [#allocation3], 16  ;;  %s237_s19 = sadd.s32 1, %s1149_s12 }
  0x29   : > { %s238_s20 = sld [smem:[#allocation5 + %s237_s19]] }
  0x2f   : > { %s239_s28 = scalar_lea.vmem %s1258_s1, %s238_s20 }
  0x30   : > { %v259_v1 = vld [vmem:[%s239_s28] sm:$0x1] }
  0x31   : > { %260 = vst [vmem:[#allocation2 + $0x1] sm:$0x1] %v259_v1 }
  0x32   : > { %285 = vsyncadd [#allocation3 + $0x1], 16  ;;  %s286_s29 = sadd.s32 2, %s1149_s12 }
  0x33   : > { %s287_s6 = sld [smem:[#allocation5 + %s286_s29]] }
  0x39   : > { %s288_s14 = scalar_lea.vmem %s1258_s1, %s287_s6 }
  0x3a   : > { %v308_v2 = vld [vmem:[%s288_s14] sm:$0x1] }
  0x3b   : > { %309 = vst [vmem:[#allocation2 + $0x2] sm:$0x1] %v308_v2 }
  0x3c   : > { %334 = vsyncadd [#allocation3 + $0x2], 16  ;;  %s335_s16 = sadd.s32 3, %s1149_s12 }
  0x3d   : > { %s336_s17 = sld [smem:[#allocation5 + %s335_s16]] }
  0x43   : > { %s337_s20 = scalar_lea.vmem %s1258_s1, %s336_s17 }
  0x44   : > { %v357_v3 = vld [vmem:[%s337_s20] sm:$0x1] }
  0x45   : > { %358 = vst [vmem:[#allocation2 + $0x3] sm:$0x1] %v357_v3 }
  0x46   : > { %383 = vsyncadd [#allocation3 + $0x3], 16  ;;  %s384_s21 = sadd.s32 4, %s1149_s12 }
  0x47   : > { %s385_s22 = sld [smem:[#allocation5 + %s384_s21]] }
  0x4d   : > { %s386_s6 = scalar_lea.vmem %s1258_s1, %s385_s22 }
  0x4e   : > { %v406_v4 = vld [vmem:[%s386_s6] sm:$0x1] }
  0x4f   : > { %407 = vst [vmem:[#allocation2 + $0x4] sm:$0x1] %v406_v4 }
  0x50   : > { %432 = vsyncadd [#allocation3 + $0x4], 16  ;;  %s433_s8 = sadd.s32 5, %s1149_s12 }
  0x51   : > { %s434_s15 = sld [smem:[#allocation5 + %s433_s8]] }
  0x57   : > { %s435_s11 = scalar_lea.vmem %s1258_s1, %s434_s15 }
  0x58   : > { %v455_v5 = vld [vmem:[%s435_s11] sm:$0x1] }
  0x59   : > { %456 = vst [vmem:[#allocation2 + $0x5] sm:$0x1] %v455_v5 }
  0x5a   : > { %481 = vsyncadd [#allocation3 + $0x5], 16  ;;  %s482_s17 = sadd.s32 6, %s1149_s12 }
  0x5b   : > { %s483_s19 = sld [smem:[#allocation5 + %s482_s17]] }
  0x61   : > { %s484_s22 = scalar_lea.vmem %s1258_s1, %s483_s19 }
  0x62   : > { %v504_v6 = vld [vmem:[%s484_s22] sm:$0x1] }
  0x63   : > { %505 = vst [vmem:[#allocation2 + $0x6] sm:$0x1] %v504_v6 }
  0x64   : > { %530 = vsyncadd [#allocation3 + $0x6], 16  ;;  %s531_s28 = sadd.s32 7, %s1149_s12 }
  0x65   : > { %s532_s29 = sld [smem:[#allocation5 + %s531_s28]] }
  0x6b   : > { %s533_s15 = scalar_lea.vmem %s1258_s1, %s532_s29 }
  0x6c   : > { %v553_v7 = vld [vmem:[%s533_s15] sm:$0x1] }
  0x6d   : > { %554 = vst [vmem:[#allocation2 + $0x7] sm:$0x1] %v553_v7 }
  0x6e   : > { %579 = vsyncadd [#allocation3 + $0x7], 16 }
  0x6f   : > { %1013 = dma.done.wait [#allocation3], 16 }
  0x70   : > { %1014 = vsyncadd [#allocation3], 4294967280 }
  0x71   : > { %1015 = dma.done.wait [#allocation3 + $0x1], 16 }
  0x72   : > { %1016 = vsyncadd [#allocation3 + $0x1], 4294967280 }
  0x73   : > { %1017 = dma.done.wait [#allocation3 + $0x2], 16 }
  0x74   : > { %1018 = vsyncadd [#allocation3 + $0x2], 4294967280 }
  0x75   : > { %1019 = dma.done.wait [#allocation3 + $0x3], 16 }
  0x76   : > { %1020 = vsyncadd [#allocation3 + $0x3], 4294967280 }
  0x77   : > { %1021 = dma.done.wait [#allocation3 + $0x4], 16 }
  0x78   : > { %1022 = vsyncadd [#allocation3 + $0x4], 4294967280 }
  0x79   : > { %1023 = dma.done.wait [#allocation3 + $0x5], 16 }
  0x7a   : > { %1024 = vsyncadd [#allocation3 + $0x5], 4294967280 }
  0x7b   : > { %1025 = dma.done.wait [#allocation3 + $0x6], 16 }
  0x7c   : > { %1026 = vsyncadd [#allocation3 + $0x6], 4294967280 }
  0x7d   : > { %1027 = dma.done.wait [#allocation3 + $0x7], 16 }
  0x7e   : > { %1028 = vsyncadd [#allocation3 + $0x7], 4294967280  ;;  %v596_v8 = vld [vmem:[#allocation2] sm:$0xff]  ;;  %vm600_vm0 = vcmask 261120   ;;  %s878_s20 = sshll.u32 %s1047_s25, 7  ;;  %s647_s21 = sshll.u32 %s183_s18, 4  ;;  %s1207_s21 = int_to_ptr.vmem [resolvable:$true] %s647_s21 }
  0x7f   : > { %v598_v9 = vld [vmem:[%s1259_s2] sm:$0xff]  ;;  %v597_v10 = vmul.f32 5.656854, %v596_v8  ;;  %s1205_s29 = scalar_lea.hbm %s1262_s5, %s878_s20  ;;  %s1266_s6 = sand.u32 1, %s1039_s24  }
  0x80   : > { %v875_v22 = vld [vmem:[%s1260_s3] ss:$0 sm:$0xff]  ;;  %s633_s8 = scalar_lea.sflag [#allocation7], %s1266_s6  ;;  %s959_s25 = scalar_lea.vmem %s1207_s21, 128 }
  0x81   : > { %v599_v11 = vadd.f32 %v598_v9, %v597_v10  ;;  %v876_v24 = vld [vmem:[%s1261_s4] ss:$0 sm:$0xff]  ;;  %p960_p2 = scmp.ne.s32.totalorder %s1207_s21, %s959_s25  ;;  %s1058_s15 = smov [#allocation6]  }
  0x82   : > { %s963_s12 = sshll.u32 %s1058_s15, 4  ;;  %s964_s12 = int_to_ptr.vmem [resolvable:$false] %s963_s12 }
  0x83   : > { %v601_v12 = vsel %vm600_vm0, %v599_v11, 0.0  ;;  %p961_p3 = pnand %p960_p2, %p1132_p9  ;;  %s965_s14 = scalar_lea.vmem %s964_s12, 256 }
  0x84   : > { %602 = vadd.xlane.f32.xlu0 %v601_v12  ;;  %p966_p5 = scmp.lt.s32.totalorder %s1207_s21, %s964_s12  ;;  %p967_p6 = scmp.lt.s32.totalorder %s965_s14, %s959_s25 }
  0x85   : > { %p962_p4 = pneg %p961_p3 }
  0x86   : > { %p968_p7 = por %p967_p6, %p966_p5 }
  0x88   : > { %p969_p8 = pnand %p968_p7, %p962_p4 }
 0x111   : > { %v603_v13 = vpop.xlane.xlu0 %602 }
 0x112   : > { %v605_v14 = vmul.f32 0.03125, %v603_v13 }
 0x114   : > { %v606_v15 = vsub.f32 %v599_v11, %v605_v14 }
 0x116   : > { %v607_v16 = vmul.f32 %v606_v15, %v606_v15 }
 0x118   : > { %v608_v17 = vsel %vm600_vm0, %v607_v16, 0.0 }
 0x119   : > { %609 = vadd.xlane.f32.xlu0 %v608_v17 }
 0x1a6   : > { %v610_v18 = vpop.xlane.xlu0 %609 }
 0x1a7   : > { %v611_v19 = vmul.f32 0.03125, %v610_v18 }
 0x1a9   : > { %v612_v20 = vadd.f32 1e-05, %v611_v19 }
 0x1ab   : > { %945 = vrsqrt.f32 %v612_v20 }
 0x1b5   : > { %v946_v21 = vpop.eup %945 }
 0x1b6   : > { %v614_v23 = vmul.f32 %v946_v21, %v606_v15 }
 0x1b8   : > { %v622_v25 = vmul.f32 %v875_v22, %v614_v23 }
 0x1ba   : > { %v630_v26 = vadd.f32 %v876_v24, %v622_v25 }
 0x1bc   : > { %631 = vst.msk [vmem:[%s183_s18] sm:$0xff] %vm600_vm0, %v630_v26 }
 0x1bd   : > { %972 = shalt.err (!%p969_p8)
}
 0x1be   : > { %s973_s13 = scalar_lea.hbm %s1205_s29, 128  ;;  %s977_s11 = scalar_lea.hbm %s1262_s5, 256 }
 0x1bf   : > { %p974_p10 = scmp.ne.s32.totalorder %s1205_s29, %s973_s13  ;;  %p978_p0 = scmp.lt.u32.totalorder %s1205_s29, %s1262_s5 }
 0x1c0   : > { %p979_p1 = scmp.lt.u32.totalorder %s977_s11, %s973_s13  ;;  %p981_p3 = scmp.lt.u32.totalorder %s973_s13, %s1205_s29 }
 0x1c1   : > { %p975_p11 = pnand %p974_p10, %p1132_p9 }
 0x1c2   : > { %p980_p2 = por %p979_p1, %p978_p0 }
 0x1c3   : > { %p976_p12 = pneg %p975_p11 }
 0x1c4   : > { %p982_p4 = por %p981_p3, %p980_p2 }
 0x1c6   : > { %p983_p5 = pnand %p982_p4, %p976_p12 }
 0x1c8   : > { %986 = shalt.err (!%p983_p5)
}
 0x1c9   : > { %889 = dma.vmem_to_hbm [thread:$0]  (%p1132_p9), %s1207_s21, 128, %s1205_s29, %s633_s8  }
 0x1ca PF: > { %p895_p6 = scmp.ge.s32.totalorder %s1055_s27, 2  ;;  %s659_s20 = sand.u32 1, %s1035_s23  }
 0x1cb   : > { %s660_s22 = scalar_lea.sflag [#allocation7], %s659_s20 }
 0x1cc   : > { %p892_p7 = pnand %p895_p6, %p1139_p13 }
 0x1ce   : > { %1030 = dma.done.wait (!%p892_p7), %s660_s22, 128  }
 0x1cf   : > { %1032 = vsyncadd (!%p892_p7), %s660_s22, 4294967168  ;;  %s24_s27 = sadd.s32 1, %s1055_s27   ;;  %s1267_s23 = smov %s1039_s24 }
 0x1d0   : > { %p21_p8 = scmp.ge.s32.totalorder %s24_s27, 4   ;;  %s1268_s24 = smov %s1043_s0 }
 0x1d1   : > { %s1269_s0 = smov %s1145_s10  ;;  %s1270_s25 = smov %s1051_s26 }
 0x1d2   : > { %s1271_s26 = smov %s1273_s30  ;;  %23 = sbr.rel (!%p21_p8) target bundleno = 19 (0x13), region = 416 }
 0x1d9   :  { %665 = vsyncpa [#allocation7], 1 }
 0x1da   :  { %667 = vsyncpa [#allocation7 + $0x1], 1 }
 0x1db   :  { %668 = vsyncmov [#allocation3] }
 0x1de   :  { %s669_s7 = vpop.sfrf %668 }
 0x1df   :  { %p881_p9 = scmp.ne.s32.totalorder %s669_s7, 0 }
 0x1e1   :  { %673 = shalt.err (%p881_p9)  }
 0x1e2   :  { %675 = vsyncmov [#allocation3 + $0x1] }
 0x1e5   :  { %s676_s9 = vpop.sfrf %675 }
 0x1e6   :  { %p882_p13 = scmp.ne.s32.totalorder %s676_s9, 0 }
 0x1e8   :  { %680 = shalt.err (%p882_p13)  }
 0x1e9   :  { %682 = vsyncmov [#allocation3 + $0x2] }
 0x1ec   :  { %s683_s21 = vpop.sfrf %682 }
 0x1ed   :  { %p883_p10 = scmp.ne.s32.totalorder %s683_s21, 0 }
 0x1ef   :  { %687 = shalt.err (%p883_p10)  }
 0x1f0   :  { %689 = vsyncmov [#allocation3 + $0x3] }
 0x1f3   :  { %s690_s10 = vpop.sfrf %689 }
 0x1f4   :  { %p884_p11 = scmp.ne.s32.totalorder %s690_s10, 0 }
 0x1f6   :  { %694 = shalt.err (%p884_p11)  }
 0x1f7   :  { %696 = vsyncmov [#allocation3 + $0x4] }
 0x1fa   :  { %s697_s27 = vpop.sfrf %696 }
 0x1fb   :  { %p885_p12 = scmp.ne.s32.totalorder %s697_s27, 0 }
 0x1fd   :  { %701 = shalt.err (%p885_p12)  }
 0x1fe   :  { %703 = vsyncmov [#allocation3 + $0x5] }
 0x201   :  { %s704_s1 = vpop.sfrf %703 }
 0x202   :  { %p886_p0 = scmp.ne.s32.totalorder %s704_s1, 0 }
 0x204   :  { %708 = shalt.err (%p886_p0)  }
 0x205   :  { %710 = vsyncmov [#allocation3 + $0x6] }
 0x208   :  { %s711_s2 = vpop.sfrf %710 }
 0x209   :  { %p887_p1 = scmp.ne.s32.totalorder %s711_s2, 0 }
 0x20b   :  { %715 = shalt.err (%p887_p1)  }
 0x20c   :  { %717 = vsyncmov [#allocation3 + $0x7] }
 0x20f   :  { %s718_s3 = vpop.sfrf %717 }
 0x210   :  { %p888_p2 = scmp.ne.s32.totalorder %s718_s3, 0 }
 0x212   :  { %722 = shalt.err (%p888_p2)  }

</bundles_post_ra>
